<compile_context>
chip_gen: v6e
topology: v6e:2x2x1
jax: 0.10.0
libtpu: 0.0.40
codegen_flags: <defaults>
</compile_context>

<pallas_src>
import functools

import jax
import jax.numpy as jnp
from jax.experimental import pallas as pl
from jax.experimental.pallas import tpu as pltpu


def _round_up(x, n):
    return ((x + n - 1) // n) * n


# ----------------------------------------------------------------------------
# Kernel: one batch tile.
#   p_off  : static python int, trunk-output row offset (= padded P, multiple of 8)
#   b0_ref : SMEM (1,)                 f32   scalar bias b[0]
#   xt_ref : VMEM (DIN_PAD, TILE_B)    bf16  [x_func | x_loc | 1]^T, zero padded
#   w1t_ref: VMEM (HR_PAD, DIN_PAD)    bf16  compact blockdiag(w1b, w1t)^T with b1 folded in
#   w2t_ref: VMEM (2*p_off, HR_PAD)    bf16  compact blockdiag(w2b, w2t)^T
#   b2_ref : VMEM (2*p_off, 1)         f32
#   out_ref: VMEM (1, TILE_B)          f32   lane-dense row of y values
# ----------------------------------------------------------------------------
def deeponet_kernel(p_off, b0_ref, xt_ref, w1t_ref, w2t_ref, b2_ref, out_ref):
    f32 = jnp.float32

    # Fused hidden layer (branch | trunk); b1 comes from the constant-1 input row.
    # Compact packing -> (nearly) all rows are real, so tanh the whole slab.
    h = jnp.tanh(jnp.dot(w1t_ref[...], xt_ref[...], preferred_element_type=f32))

    # Fused output layer (branch | trunk).
    z = (
        jnp.dot(w2t_ref[...], h.astype(w2t_ref.dtype), preferred_element_type=f32)
        + b2_ref[...]
    )

    branch = z[:p_off, :]            # branch net last layer is linear
    trunk = jnp.tanh(z[p_off:, :])   # trunk output gets activation_trunk (tanh); trunk rows only

    # merge_branch_trunk: einsum('bi,bi->b') + b0; sublane reduction gives a
    # lane-dense (1, TILE_B) row directly. Padded rows contribute 0 * tanh(0) = 0.
    out_ref[...] = jnp.sum(branch * trunk, axis=0, keepdims=True) + b0_ref[0]


# ----------------------------------------------------------------------------
# Parameter packing (once, outside the kernel): compact block-diagonal fusion of
# branch and trunk weights, transposed + zero-padded only to sublane multiples.
# Weight layout convention: w* are [in, out] (x @ W + b == PyTorch x @ W_pt.T + b).
# ----------------------------------------------------------------------------
def pack_deeponet_params(params, *, compute_dtype=jnp.bfloat16):
    w1b, w1t = params["w1b"], params["w1t"]
    w2b, w2t = params["w2b"], params["w2t"]
    b1b, b1t = params["b1b"], params["b1t"]
    b2b, b2t = params["b2b"], params["b2t"]

    m, Hb = w1b.shape
    d, Ht = w1t.shape
    _, Pb = w2b.shape
    _, Pt = w2t.shape
    assert Pb == Pt, "branch/trunk output sizes must match (SingleOutputStrategy)"
    P = Pb

    din = m + d + 1                      # +1: constant-one row carrying the fused b1
    din_pad = _round_up(din, 16)         # bf16 sublane multiple (contraction dim)
    hr_pad = _round_up(Hb + Ht, 16)      # compact fused hidden
    p_off = _round_up(P, 8)              # trunk-output row offset, sublane aligned
    pr_pad = 2 * p_off                   # compact fused output rows (multiple of 16)

    # Layer 1: z1 = W1_fused^T @ [x_func ; x_loc ; 1]   (b1 folded into last column)
    w1_full = jnp.zeros((hr_pad, din_pad), jnp.float32)
    w1_full = w1_full.at[:Hb, :m].set(w1b.T)
    w1_full = w1_full.at[Hb:Hb + Ht, m:m + d].set(w1t.T)
    w1_full = w1_full.at[:Hb, m + d].set(b1b)
    w1_full = w1_full.at[Hb:Hb + Ht, m + d].set(b1t)

    # Layer 2: z2 = W2_fused^T @ h ; branch rows [0:P], trunk rows [p_off:p_off+P]
    w2_full = jnp.zeros((pr_pad, hr_pad), jnp.float32)
    w2_full = w2_full.at[:P, :Hb].set(w2b.T)
    w2_full = w2_full.at[p_off:p_off + P, Hb:Hb + Ht].set(w2t.T)
    b2_full = jnp.zeros((pr_pad, 1), jnp.float32)
    b2_full = b2_full.at[:P, 0].set(b2b)
    b2_full = b2_full.at[p_off:p_off + P, 0].set(b2t)

    return {
        "w1t": w1_full.astype(compute_dtype),
        "w2t": w2_full.astype(compute_dtype),
        "b2": b2_full,
        "b0": params["b0"].reshape(1).astype(jnp.float32),
        "meta": {"m": m, "d": d, "p_off": p_off},
    }


# ----------------------------------------------------------------------------
# Wrapper: batch-gridded pallas_call.
# ----------------------------------------------------------------------------
def deeponet_forward(x_func, x_loc, packed, *, tile_b=2048):
    B, m = x_func.shape
    _, d = x_loc.shape

    w1t_p, w2t_p = packed["w1t"], packed["w2t"]
    b2_p, b0 = packed["b2"], packed["b0"]
    meta = packed["meta"]
    assert meta["m"] == m and meta["d"] == d, "packed params do not match input dims"
    p_off = meta["p_off"]

    hr_pad, din_pad = w1t_p.shape
    pr_pad, _ = w2t_p.shape
    compute_dtype = w1t_p.dtype

    # Lane-dense, megacore-friendly tile: multiple of 256; don't over-pad tiny batches.
    tile_b = _round_up(max(int(tile_b), 256), 256)
    tile_b = min(tile_b, _round_up(max(B, 1), 256))
    b_pad = _round_up(max(B, 1), tile_b)
    num_tiles = b_pad // tile_b

    # Build [x_func | x_loc | 1]^T, zero-padded to (din_pad, b_pad), in bf16.
    # TODO(synk): if profiling ever shows this wrapper-side transpose's HBM round
    # trip exposed, feed x_func/x_loc as (tile_b, m)/(tile_b, d) blocks and do the
    # tiny transpose in-kernel on the XLU instead.
    xt = jnp.zeros((din_pad, b_pad), compute_dtype)
    xt = xt.at[:m, :B].set(x_func.T.astype(compute_dtype))
    xt = xt.at[m:m + d, :B].set(x_loc.T.astype(compute_dtype))
    xt = xt.at[m + d, :B].set(jnp.ones((B,), compute_dtype))   # bias row (b1 fold)

    flops = 2 * b_pad * (din_pad * hr_pad + hr_pad * pr_pad)
    transcendentals = b_pad * (hr_pad + p_off)
    bytes_accessed = (
        xt.size * xt.dtype.itemsize
        + w1t_p.size * w1t_p.dtype.itemsize
        + w2t_p.size * w2t_p.dtype.itemsize
        + b2_p.size * 4 + 4
        + b_pad * 4
    )

    out_row = pl.pallas_call(
        functools.partial(deeponet_kernel, p_off),
        out_shape=jax.ShapeDtypeStruct((1, b_pad), jnp.float32),
        grid=(num_tiles,),
        in_specs=[
            pl.BlockSpec(memory_space=pltpu.MemorySpace.SMEM),      # b0 scalar
            pl.BlockSpec((din_pad, tile_b), lambda i: (0, i)),      # X^T batch tile
            pl.BlockSpec((hr_pad, din_pad), lambda i: (0, 0)),      # W1^T (resident)
            pl.BlockSpec((pr_pad, hr_pad), lambda i: (0, 0)),       # W2^T (resident)
            pl.BlockSpec((pr_pad, 1), lambda i: (0, 0)),            # b2   (resident)
        ],
        out_specs=pl.BlockSpec((1, tile_b), lambda i: (0, i)),      # lane-dense row
        compiler_params=pltpu.CompilerParams(
            dimension_semantics=("parallel",),
            vmem_limit_bytes=32 * 1024 * 1024,   # plenty; ~2 MiB/step at tile_b=2048
        ),
        cost_estimate=pl.CostEstimate(
            flops=flops,
            transcendentals=transcendentals,
            bytes_accessed=bytes_accessed,
        ),
    )(b0, xt, w1t_p, w2t_p, b2_p)

    # (1, B_pad) lane-dense row -> (B, 1) as in the PyTorch module.
    return out_row[0, :B][:, None]


# ----------------------------------------------------------------------------
# Pure-JAX reference with the same mixed precision as the kernel
# (bf16 MXU inputs, f32 accumulation; b1 folded through bf16 like the kernel).
# ----------------------------------------------------------------------------
def deeponet_reference(x_func, x_loc, params, *, compute_dtype=jnp.bfloat16):
    f32 = jnp.float32

    def mm(a, w):
        return jnp.dot(a.astype(compute_dtype), w.astype(compute_dtype),
                       preferred_element_type=f32)

    b1b = params["b1b"].astype(compute_dtype).astype(f32)
    b1t = params["b1t"].astype(compute_dtype).astype(f32)

    hb = jnp.tanh(mm(x_func, params["w1b"]) + b1b)
    branch = mm(hb, params["w2b"]) + params["b2b"]
    ht = jnp.tanh(mm(x_loc, params["w1t"]) + b1t)
    trunk = jnp.tanh(mm(ht, params["w2t"]) + params["b2t"])
    return jnp.sum(branch * trunk, axis=-1, keepdims=True) + params["b0"][0]


def glorot_normal(key, shape):
    fan_in, fan_out = shape
    std = (2.0 / (fan_in + fan_out)) ** 0.5
    return std * jax.random.normal(key, shape, dtype=jnp.float32)


if __name__ == "__main__":
    # Module-consistent shapes: layer_sizes_branch=[m,H,P], layer_sizes_trunk=[d,H,P].
    # B=300 is not a tile multiple -> exercises batch padding and a 2-step grid
    # (even tile count keeps v7x's two TensorCores balanced).
    B, m, d, H, P = 300, 8, 2, 32, 32

    key = jax.random.PRNGKey(0)
    k_xf, k_xl, k1, k2, k3, k4, k5, k6, k7, k8 = jax.random.split(key, 10)

    x_func = jax.random.normal(k_xf, (B, m), dtype=jnp.float32)
    x_loc = jax.random.normal(k_xl, (B, d), dtype=jnp.float32)

    # (DeepXDE default init is zeros for biases/b0; use small nonzero values here
    #  so the bias paths are actually validated.)
    params = {
        "w1b": glorot_normal(k1, (m, H)),
        "b1b": 0.1 * jax.random.normal(k5, (H,), dtype=jnp.float32),
        "w2b": glorot_normal(k2, (H, P)),
        "b2b": 0.1 * jax.random.normal(k6, (P,), dtype=jnp.float32),
        "w1t": glorot_normal(k3, (d, H)),
        "b1t": 0.1 * jax.random.normal(k7, (H,), dtype=jnp.float32),
        "w2t": glorot_normal(k4, (H, P)),
        "b2t": 0.1 * jax.random.normal(k8, (P,), dtype=jnp.float32),
        "b0": jnp.full((1,), 0.25, jnp.float32),
    }

    packed = pack_deeponet_params(params, compute_dtype=jnp.bfloat16)
    out = deeponet_forward(x_func, x_loc, packed, tile_b=256)
    out = jax.block_until_ready(out)

    ref = deeponet_reference(x_func, x_loc, params, compute_dtype=jnp.bfloat16)
    assert out.shape == (B, 1)
    assert jnp.allclose(out, ref, atol=2e-3, rtol=2e-3), "mismatch vs reference"

    print("KERNEL_OK")
</pallas_src>

<mosaic_0001>
module attributes {stable_mosaic.version = 11 : i64} {
  func.func @deeponet_kernel(%arg0: i32, %arg1: memref<1xf32, #tpu.memory_space<smem>>, %arg2: memref<16x256xbf16, #tpu.memory_space<vmem>>, %arg3: memref<64x16xbf16, #tpu.memory_space<vmem>>, %arg4: memref<64x64xbf16, #tpu.memory_space<vmem>>, %arg5: memref<64x1xf32, #tpu.memory_space<vmem>>, %arg6: memref<1x256xf32, #tpu.memory_space<vmem>>) attributes {dimension_semantics = [#tpu.dimension_semantics<parallel>], iteration_bounds = array<i64: 2>, scalar_prefetch = 0 : i64, scratch_operands = 0 : i64, tpu.core_type = #tpu.core_type<tc>, window_params = [{transform_indices = @transform_0, window_bounds = array<i64: 1>}, {transform_indices = @transform_1, window_bounds = array<i64: 16, 256>}, {pipeline_mode = #tpu.pipeline_mode<synchronous>, transform_indices = @transform_2, window_bounds = array<i64: 64, 16>}, {pipeline_mode = #tpu.pipeline_mode<synchronous>, transform_indices = @transform_3, window_bounds = array<i64: 64, 64>}, {pipeline_mode = #tpu.pipeline_mode<synchronous>, transform_indices = @transform_4, window_bounds = array<i64: 64, 1>}, {transform_indices = @transform_5, window_bounds = array<i64: 1, 256>}]} {
    %c0 = arith.constant 0 : index
    %c0_0 = arith.constant 0 : index
    %0 = vector.load %arg3[%c0, %c0_0] : memref<64x16xbf16, #tpu.memory_space<vmem>>, vector<64x16xbf16>
    %c0_1 = arith.constant 0 : index
    %c0_2 = arith.constant 0 : index
    %1 = vector.load %arg2[%c0_1, %c0_2] : memref<16x256xbf16, #tpu.memory_space<vmem>>, vector<16x256xbf16>
    %cst = arith.constant dense<0.000000e+00> : vector<64x256xf32>
    %2 = tpu.matmul %0, %1, %cst {dimension_numbers = #tpu.dot_dimension_numbers<[1], [0], [0], [1], [0, 0, 1, 1], [], []>} : vector<64x16xbf16>, vector<16x256xbf16>, vector<64x256xf32> -> vector<64x256xf32>
    %3 = math.tanh %2 : vector<64x256xf32>
    %c0_3 = arith.constant 0 : index
    %c0_4 = arith.constant 0 : index
    %4 = vector.load %arg4[%c0_3, %c0_4] : memref<64x64xbf16, #tpu.memory_space<vmem>>, vector<64x64xbf16>
    %5 = arith.truncf %3 : vector<64x256xf32> to vector<64x256xbf16>
    %cst_5 = arith.constant dense<0.000000e+00> : vector<64x256xf32>
    %6 = tpu.matmul %4, %5, %cst_5 {dimension_numbers = #tpu.dot_dimension_numbers<[1], [0], [0], [1], [0, 0, 1, 1], [], []>} : vector<64x64xbf16>, vector<64x256xbf16>, vector<64x256xf32> -> vector<64x256xf32>
    %c0_6 = arith.constant 0 : index
    %c0_7 = arith.constant 0 : index
    %7 = vector.load %arg5[%c0_6, %c0_7] : memref<64x1xf32, #tpu.memory_space<vmem>>, vector<64x1xf32>
    %8 = vector.broadcast %7 : vector<64x1xf32> to vector<64x256xf32>
    %9 = arith.addf %6, %8 : vector<64x256xf32>
    %10 = vector.extract_strided_slice %9 {offsets = [0, 0], sizes = [32, 256], strides = [1, 1]} : vector<64x256xf32> to vector<32x256xf32>
    %11 = vector.extract_strided_slice %9 {offsets = [32, 0], sizes = [32, 256], strides = [1, 1]} : vector<64x256xf32> to vector<32x256xf32>
    %12 = math.tanh %11 : vector<32x256xf32>
    %13 = arith.mulf %10, %12 : vector<32x256xf32>
    %cst_8 = arith.constant dense<0.000000e+00> : vector<256xf32>
    %14 = vector.multi_reduction <add>, %13, %cst_8 [0] : vector<32x256xf32> to vector<256xf32>
    %15 = vector.shape_cast %14 : vector<256xf32> to vector<1x256xf32>
    %c0_9 = arith.constant 0 : index
    %16 = memref.load %arg1[%c0_9] : memref<1xf32, #tpu.memory_space<smem>>
    %17 = vector.broadcast %16 : f32 to vector<1x256xf32>
    %18 = arith.addf %15, %17 : vector<1x256xf32>
    %c0_10 = arith.constant 0 : index
    %c0_11 = arith.constant 0 : index
    %19 = vector.load %arg6[%c0_10, %c0_11] : memref<1x256xf32, #tpu.memory_space<vmem>>, vector<1x256xf32>
    tpu.vector_store %arg6[%c0_10, %c0_11], %18 {strides = array<i32>} : memref<1x256xf32, #tpu.memory_space<vmem>>, vector<1x256xf32>,
    return
  }
  func.func @transform_0(%arg0: i32) -> i32 {
    %c0_i32 = arith.constant 0 : i32
    %c0_i32_0 = arith.constant 0 : i32
    return %c0_i32 : i32
  }
  func.func @transform_1(%arg0: i32) -> (i32, i32) {
    %c0_i32 = arith.constant 0 : i32
    %c0_i32_0 = arith.constant 0 : i32
    return %c0_i32, %arg0 : i32, i32
  }
  func.func @transform_2(%arg0: i32) -> (i32, i32) {
    %c0_i32 = arith.constant 0 : i32
    %c0_i32_0 = arith.constant 0 : i32
    %c0_i32_1 = arith.constant 0 : i32
    return %c0_i32, %c0_i32_0 : i32, i32
  }
  func.func @transform_3(%arg0: i32) -> (i32, i32) {
    %c0_i32 = arith.constant 0 : i32
    %c0_i32_0 = arith.constant 0 : i32
    %c0_i32_1 = arith.constant 0 : i32
    return %c0_i32, %c0_i32_0 : i32, i32
  }
  func.func @transform_4(%arg0: i32) -> (i32, i32) {
    %c0_i32 = arith.constant 0 : i32
    %c0_i32_0 = arith.constant 0 : i32
    %c0_i32_1 = arith.constant 0 : i32
    return %c0_i32, %c0_i32_0 : i32, i32
  }
  func.func @transform_5(%arg0: i32) -> (i32, i32) {
    %c0_i32 = arith.constant 0 : i32
    %c0_i32_0 = arith.constant 0 : i32
    return %c0_i32, %arg0 : i32, i32
  }
}

</mosaic_0001>

<bundles_post_ra>
// kernel: tpu_custom_call.1
= control target key start
LH: loop header
LB: loop body
LE: loop exit
PB: predicated region body
PF: predicated region fallthrough
CT: control target
= control target key end

     0   :  { %s1109_s0 = inlined_call_operand.<no memory space> [shape: f32[1], index: 0, kind: input, shape index: {}]   ;;  %s1110_s1 = inlined_call_operand.vmem [shape: bf16[16,512], index: 1, kind: input, shape index: {}]   ;;  %s1111_s2 = inlined_call_operand.vmem [shape: bf16[64,16], index: 2, kind: input, shape index: {}]   ;;  %s1112_s3 = inlined_call_operand.vmem [shape: bf16[64,64], index: 3, kind: input, shape index: {}]   ;;  %s1113_s4 = inlined_call_operand.vmem [shape: f32[64,1], index: 4, kind: input, shape index: {}]   ;;  %s1114_s5 = inlined_call_operand.hbm [shape: f32[1,512], index: 5, kind: output, shape index: {}]  }
   0x1   :  { %10 = sst [smem:[#allocation2]] %s1109_s0 }
   0x2   :  { %11 = vsyncpa [#allocation5], 0 }
   0x3   :  { %13 = vsyncpa [#allocation5 + $0x1], 0  ;;  %s954_s20 = smov 0   ;;  %s956_s21 = smov 0  }
   0x4   :  { %s958_s22 = smov 0   ;;  %s960_s23 = smov 0  }
   0x5 LB: > { %s719_s0 = sadd.s32 4294967295, %s916_s23   ;;  %s720_s24 = sadd.s32 4294967294, %s916_s23   ;;  %s916_s23 = sphi %s960_s23, %s1122_s23   ;;  %s912_s22 = sphi %s958_s22, %s1121_s22   ;;  %s908_s21 = sphi %s956_s21, %s1120_s21   ;;  %s904_s20 = sphi %s954_s20, %s1119_s20  }
   0x6   : > { %s977_s25 = sadd.s32 1, %s916_s23   ;;  %s47_s26 = sadd.s32 1, %s912_s22 }
   0x7   : > { %s44_s27 = ssub.s32 %s916_s23, %s977_s25  ;;  %p54_p0 = scmp.ne.s32.totalorder %s912_s22, %s908_s21 }
   0x8   : > { %p45_p1 = scmp.eq.s32.totalorder %s44_s27, 0  ;;  %p55_p2 = scmp.eq.s32.totalorder %s916_s23, 0 }
   0x9   : > { %p147_p3 = scmp.eq.s32.totalorder %s719_s0, 1  ;;  %p152_p4 = scmp.ne.s32.totalorder %s908_s21, %s904_s20 }
   0xa   : > { %s990_s28 = scalar_select %p45_p1, %s912_s22, %s47_s26  }
   0xb   : > { %p56_p5 = por %p55_p2, %p54_p0  ;;  %p992_p6 = por %p147_p3, %p54_p0 }
   0xc   : > { %p153_p7 = scmp.eq.s32.totalorder %s720_s24, 1  ;;  %p1115_p9 = scmp.ge.s32.totalorder %s916_s23, 2 }
   0xe   : > { %p996_p8 = por %p153_p7, %p152_p4  ;;  %181 = sbr.rel (%p1115_p9) target bundleno = 24 (0x18), region = 32 }
  0x13   : > { %184 = sbr.rel (!%p56_p5) target bundleno = 24 (0x18), region = 36  ;;  %s186_s6 = sand.u32 (%p56_p5), 1, %s912_s22  }
  0x14   : > { %s752_s7 = sshll.u32 (%p56_p5), %s916_s23, 3  ;;  %s723_s8 = sshll.u32 (%p56_p5), %s186_s6, 4 }
  0x15   : > { %s191_s11 = scalar_lea.vmem (%p56_p5), %s1110_s1, %s752_s7  ;;  %s188_s12 = scalar_lea.vmem (%p56_p5), [#allocation3], %s723_s8 }
  0x16   : > { %v222_v0 = vld [vmem:[%s191_s11] sm:$0xff] (%p56_p5)  ;;  %v224_v1 = vld [vmem:[%s191_s11 + $0x10] sm:$0xff] (%p56_p5) }
  0x17   : > { %223 = vst [vmem:[%s188_s12] sm:$0xff] (%p56_p5), %v222_v0  ;;  %225 = vst [vmem:[%s188_s12 + $0x8] sm:$0xff] (%p56_p5), %v224_v1 }
  0x18 PF: > { %p726_p10 = scmp.ge.s32.totalorder %s916_s23, 1  ;;  %p230_p11 = scmp.lt.s32.totalorder %s916_s23, 3 }
  0x1a   : > { %p231_p12 = pnand %p726_p10, %p230_p11 }
  0x1b   : > { %s1011_s13 = sand.u32 (!%p231_p12), 1, %s908_s21   ;;  %s613_s16 = sld [smem:[#allocation2]] (!%p231_p12) }
  0x1c   : > { %234 = sbr.rel (%p231_p12) target bundleno = 571 (0x23b), region = 74  ;;  %s727_s14 = sshll.u32 (!%p231_p12), %s1011_s13, 4 }
  0x1d   : > { %s239_s15 = scalar_lea.vmem (!%p231_p12), [#allocation3], %s727_s14  ;;  %s728_s17 = sshll.u32 (!%p231_p12), %s1011_s13, 1 }
  0x1e   : > { %s753_s18 = sshll.u32 (!%p231_p12), %s719_s0, 5  ;;  %s263_s19 = scalar_lea.vmem (!%p231_p12), [#allocation4], %s728_s17 }
  0x1f   : > { %s655_s24 = sshll.u32 (!%p231_p12), %s263_s19, 4  ;;  %s653_s6 = scalar_lea.hbm (!%p231_p12), %s1114_s5, %s753_s18  ;;  %s656_s24 = int_to_ptr.vmem [resolvable:$true] %s655_s24 }
  0x20   : > { %s641_s7 = scalar_lea.sflag (!%p231_p12), [#allocation5], %s1011_s13  ;;  %s856_s8 = scalar_lea.vmem (!%p231_p12), %s656_s24, 32 }
  0x21   : > { %v918_v2 = vmov 0   ;;  %v797_v3 = vld [vmem:[%s239_s15 + $0x4] ss:$8 sps:$4 sm:$0xff]   ;;  %v799_v4 = vld [vmem:[%s239_s15] ss:$8 sps:$4 sm:$0xff]   ;;  %vm307_vm0 = vcmask 130048   ;;  %p857_p13 = scmp.ne.s32.totalorder %s656_s24, %s856_s8 }
  0x22   : > { %352 = vmatprep.mubr.bf16.mxu0 %v918_v2  ;;  %538 = vmatprep.mubr.bf16.mxu1 %v918_v2  ;;  %v800_v5 = vld [vmem:[%s1111_s2] sm:$0xff]   ;;  %v801_v6 = vld [vmem:[%s1111_s2 + $0x8] sm:$0xff]   ;;  %v802_v7 = vld [vmem:[%s1111_s2 + $0x10] sm:$0xff]   ;;  %vm493_vm1 = vcmask 523264   ;;  %s920_s9 = smov [#allocation4]  }
  0x23   : > { %795 = vset.pattern.permute.xlu0 %v918_v2  ;;  %796 = vset.pattern.permute.xlu1 %v918_v2  ;;  %v803_v8 = vld [vmem:[%s1111_s2 + $0x18] sm:$0xff]   ;;  %v429_v9 = vld [vmem:[%s1113_s4 + $0x20] sm:$0xff]  ;;  %v431_v10 = vld [vmem:[%s1113_s4 + $0x30] sm:$0xff]  ;;  %p858_p0 = pnand %p857_p13, %p992_p6  ;;  %s860_s10 = sshll.u32 %s920_s9, 4  ;;  %s861_s10 = int_to_ptr.vmem [resolvable:$false] %s860_s10 }
  0x24   : > { %334 = vmatprep.subr.bf16.mxu0 %v797_v3  ;;  %455 = vperm.xlu0 %795, %v429_v9   ;;  %v430_v11 = vld [vmem:[%s1113_s4 + $0x28] sm:$0xff]  ;;  %v432_v12 = vld [vmem:[%s1113_s4 + $0x38] sm:$0xff]  ;;  %v425_v13 = vld [vmem:[%s1113_s4] sm:$0xff]  ;;  %s862_s0 = scalar_lea.vmem %s861_s10, 64  ;;  %p863_p2 = scmp.lt.s32.totalorder %s656_s24, %s861_s10 }
  0x25   : > { %335 = vmatpush1.bf16.msra.mxu0 %v799_v4  ;;  %465 = vperm.xlu1 %796, %v431_v10   ;;  %v426_v14 = vld [vmem:[%s1113_s4 + $0x8] sm:$0xff]  ;;  %v427_v15 = vld [vmem:[%s1113_s4 + $0x10] sm:$0xff]  ;;  %v428_v16 = vld [vmem:[%s1113_s4 + $0x18] sm:$0xff]  ;;  %p859_p1 = pneg %p858_p0  ;;  %p864_p3 = scmp.lt.s32.totalorder %s862_s0, %s856_s8 }
  0x26   : > { %v804_v57 = vld [vmem:[%s1112_s3] sm:$0xff]   ;;  %v805_v58 = vld [vmem:[%s1112_s3 + $0x8] sm:$0xff]   ;;  %v806_v59 = vld [vmem:[%s1112_s3 + $0x10] sm:$0xff]  }
  0x27   : > { %v807_v60 = vld [vmem:[%s1112_s3 + $0x18] sm:$0xff]   ;;  %p865_p4 = por %p864_p3, %p863_p2 }
  0x28   : > { %735 = vmatmul.mubr.msk.bf16.vlgmr.msra.gmra.mxu0 %vm307_vm0, %v800_v5  ;;  %460 = vperm.xlu0 %795, %v430_v11  }
  0x29   : > { %362 = vmatprep.mubr.bf16.mxu0 %v918_v2  ;;  %470 = vperm.xlu1 %796, %v432_v12   ;;  %p866_p5 = pnand %p865_p4, %p859_p1 }
  0x2c   : > { %435 = vperm.xlu0 %795, %v425_v13  }
  0x2d   : > { %440 = vperm.xlu1 %796, %v426_v14  }
  0x30   : > { %736 = vmatmul.mubr.msk.bf16.gmra.mxu0 %vm307_vm0, %v801_v6  ;;  %445 = vperm.xlu0 %795, %v427_v15  }
  0x31   : > { %372 = vmatprep.mubr.bf16.mxu0 %v918_v2  ;;  %450 = vperm.xlu1 %796, %v428_v16  }
  0x38   : > { %737 = vmatmul.mubr.msk.bf16.gmra.mxu0 %vm307_vm0, %v802_v7 }
  0x39   : > { %382 = vmatprep.mubr.bf16.mxu0 %v918_v2 }
  0x40   : > { %738 = vmatmul.mubr.msk.bf16.gmra.mxu0 %vm307_vm0, %v803_v8 }
  0x9f   : > { %v456_v5 = vpop.permute.xlu0 %455 }
  0xa0   : > { %v466_v12 = vpop.permute.xlu1 %465 }
  0xa3   : > { %v461_v9 = vpop.permute.xlu0 %460 }
  0xe8   : > { %v354_v17 = vpop.f32.mrf.mxu0 }
  0xea   : > { %v356_v18 = vpop.f32.mrf.mxu0 }
  0xec   : > { %v358_v19 = vpop.f32.mrf.mxu0 }
  0xee   : > { %v360_v20 = vpop.f32.mrf.mxu0 }
  0xf0   : > { %v364_v21 = vpop.f32.mrf.mxu0 }
  0xf2   : > { %v366_v22 = vpop.f32.mrf.mxu0 }
  0xf4   : > { %v368_v23 = vpop.f32.mrf.mxu0 }
  0xf6   : > { %v370_v24 = vpop.f32.mrf.mxu0 }
  0xf8   : > { %v374_v25 = vpop.f32.mrf.mxu0 }
  0xfa   : > { %v376_v26 = vpop.f32.mrf.mxu0 }
  0xfc   : > { %v378_v27 = vpop.f32.mrf.mxu0 }
  0xfe   : > { %v380_v28 = vpop.f32.mrf.mxu0 }
  0xff   : > { %808 = vtanh.f32 %v380_v28 }
 0x100   : > { %v384_v29 = vpop.f32.mrf.mxu0 }
 0x102   : > { %v386_v30 = vpop.f32.mrf.mxu0 }
 0x103   : > { %810 = vtanh.f32 %v386_v30 }
 0x104   : > { %v388_v31 = vpop.f32.mrf.mxu0 }
 0x105   : > { %812 = vtanh.f32 %v388_v31 }
 0x106   : > { %v390_v32 = vpop.f32.mrf.mxu0 }
 0x107   : > { %814 = vtanh.f32 %v390_v32 }
 0x108   : > { %816 = vtanh.f32 %v384_v29 }
 0x109   : > { %818 = vtanh.f32 %v376_v26 }
 0x10a   : > { %820 = vtanh.f32 %v378_v27 }
 0x10b   : > { %822 = vtanh.f32 %v370_v24 }
 0x10c   : > { %824 = vtanh.f32 %v374_v25  ;;  %v809_v33 = vpop.eup %808  ;;  %v436_v25 = vpop.permute.xlu0 %435 }
 0x10d   : > { %826 = vtanh.f32 %v366_v22 }
 0x10e   : > { %828 = vtanh.f32 %v368_v23 }
 0x10f   : > { %830 = vtanh.f32 %v360_v20  ;;  %v471_v20 = vpop.permute.xlu1 %470 }
 0x110   : > { %832 = vtanh.f32 %v364_v21  ;;  %v811_v34 = vpop.eup %810  ;;  %v446_v28 = vpop.permute.xlu0 %445 }
 0x111   : > { %834 = vtanh.f32 %v356_v18 }
 0x112   : > { %836 = vtanh.f32 %v358_v19  ;;  %v813_v35 = vpop.eup %812 }
 0x113   : > { %838 = vtanh.f32 %v354_v17  ;;  %v441_v26 = vpop.permute.xlu1 %440 }
 0x114   : > { %v815_v36 = vpop.eup %814 }
 0x115   : > { %v817_v37 = vpop.eup %816  ;;  %v424_v38 = vpack.c.bf16 %v815_v36, %v811_v34 }
 0x116   : > { %v819_v39 = vpop.eup %818  ;;  %v423_v40 = vpack.c.bf16 %v813_v35, %v817_v37 }
 0x117   : > { %v821_v41 = vpop.eup %820  ;;  %514 = vmatprep.subr.bf16.mxu1 %v424_v38  ;;  %v422_v42 = vpack.c.bf16 %v809_v33, %v819_v39  ;;  %v451_v39 = vpop.permute.xlu1 %450 }
 0x118   : > { %v823_v43 = vpop.eup %822  ;;  %515 = vmatpush1.bf16.msra.mxu1 %v423_v40 }
 0x119   : > { %v825_v44 = vpop.eup %824  ;;  %516 = vmatprep.subr.bf16.mxu1 %v422_v42 }
 0x11a   : > { %v827_v45 = vpop.eup %826  ;;  %v421_v46 = vpack.c.bf16 %v821_v41, %v825_v44 }
 0x11b   : > { %v829_v47 = vpop.eup %828  ;;  %v420_v48 = vpack.c.bf16 %v823_v43, %v827_v45 }
 0x11c   : > { %v831_v49 = vpop.eup %830  ;;  %517 = vmatpush1.bf16.msra.mxu1 %v421_v46 }
 0x11d   : > { %v833_v50 = vpop.eup %832  ;;  %518 = vmatprep.subr.bf16.mxu1 %v420_v48 }
 0x11e   : > { %v835_v51 = vpop.eup %834  ;;  %v419_v52 = vpack.c.bf16 %v829_v47, %v833_v50 }
 0x11f   : > { %v837_v53 = vpop.eup %836  ;;  %v418_v54 = vpack.c.bf16 %v831_v49, %v835_v51 }
 0x120   : > { %519 = vmatpush1.bf16.msra.mxu1 %v419_v52  ;;  %v839_v55 = vpop.eup %838 }
 0x121   : > { %520 = vmatprep.subr.bf16.mxu1 %v418_v54  ;;  %v417_v56 = vpack.c.bf16 %v837_v53, %v839_v55 }
 0x124   : > { %521 = vmatpush1.bf16.msra.mxu1 %v417_v56 }
 0x127   : > { %743 = vmatmul.mubr.msk.bf16.vlgmr.msra.gmra.mxu1 %vm493_vm1, %v804_v57 }
 0x128   : > { %548 = vmatprep.mubr.bf16.mxu1 %v918_v2 }
 0x12f   : > { %744 = vmatmul.mubr.msk.bf16.gmra.mxu1 %vm493_vm1, %v805_v58 }
 0x130   : > { %558 = vmatprep.mubr.bf16.mxu1 %v918_v2 }
 0x137   : > { %745 = vmatmul.mubr.msk.bf16.gmra.mxu1 %vm493_vm1, %v806_v59 }
 0x138   : > { %568 = vmatprep.mubr.bf16.mxu1 %v918_v2 }
 0x13f   : > { %746 = vmatmul.mubr.msk.bf16.gmra.mxu1 %vm493_vm1, %v807_v60 }
 0x1e7   : > { %v540_v61 = vpop.f32.mrf.mxu1 }
 0x1e8   : > { %v541_v33 = vadd.f32 %v540_v61, %v436_v25 }
 0x1e9   : > { %v542_v62 = vpop.f32.mrf.mxu1 }
 0x1ea   : > { %v543_v38 = vadd.f32 %v542_v62, %v436_v25 }
 0x1eb   : > { %v544_v63 = vpop.f32.mrf.mxu1 }
 0x1ec   : > { %v545_v30 = vadd.f32 %v544_v63, %v441_v26 }
 0x1ed   : > { %v546_v0 = vpop.f32.mrf.mxu1 }
 0x1ee   : > { %v547_v34 = vadd.f32 %v546_v0, %v441_v26 }
 0x1ef   : > { %v550_v1 = vpop.f32.mrf.mxu1 }
 0x1f0   : > { %v551_v35 = vadd.f32 %v550_v1, %v446_v28 }
 0x1f1   : > { %v552_v3 = vpop.f32.mrf.mxu1 }
 0x1f2   : > { %v553_v40 = vadd.f32 %v552_v3, %v446_v28  ;;  %v919_v3 = vmov 1966171168  }
 0x1f3   : > { %v554_v4 = vpop.f32.mrf.mxu1 }
 0x1f4   : > { %v555_v45 = vadd.f32 %v554_v4, %v451_v39  ;;  %v621_v4 = vunpack.c.l.s4 %v919_v3 }
 0x1f5   : > { %v556_v6 = vpop.f32.mrf.mxu1 }
 0x1f6   : > { %v557_v50 = vadd.f32 %v556_v6, %v451_v39 }
 0x1f7   : > { %v560_v7 = vpop.f32.mrf.mxu1 }
 0x1f8   : > { %v561_v10 = vadd.f32 %v560_v7, %v456_v5 }
 0x1f9   : > { %v562_v8 = vpop.f32.mrf.mxu1 }
 0x1fa   : > { %v563_v13 = vadd.f32 %v562_v8, %v456_v5  ;;  %v623_v5 = vlaneseq }
 0x1fb   : > { %v564_v11 = vpop.f32.mrf.mxu1 }
 0x1fc   : > { %v565_v2 = vadd.f32 %v564_v11, %v461_v9  ;;  %v624_v11 = vshrl.u32 %v623_v5, 7  ;;  %vm637_vm2 = vcmp.lt.s32.totalorder %v623_v5, 256 }
 0x1fd   : > { %v566_v14 = vpop.f32.mrf.mxu1 }
 0x1fe   : > { %840 = vtanh.f32 %v565_v2  ;;  %v567_v15 = vadd.f32 %v566_v14, %v461_v9  ;;  %v614_v2 = vstv %s613_s16 }
 0x1ff   : > { %842 = vtanh.f32 %v561_v10  ;;  %v570_v16 = vpop.f32.mrf.mxu1  ;;  %v622_v10 = vunpack.c.0.s8 %v621_v4 }
 0x200   : > { %844 = vtanh.f32 %v567_v15  ;;  %v571_v17 = vadd.f32 %v570_v16, %v466_v12 }
 0x201   : > { %846 = vtanh.f32 %v563_v13  ;;  %v572_v18 = vpop.f32.mrf.mxu1  ;;  %v625_v15 = vsub.s32 %v622_v10, %v624_v11 }
 0x202   : > { %848 = vtanh.f32 %v571_v17  ;;  %v573_v19 = vadd.f32 %v572_v18, %v466_v12 }
 0x203   : > { %v574_v21 = vpop.f32.mrf.mxu1 }
 0x204   : > { %850 = vtanh.f32 %v573_v19  ;;  %v575_v22 = vadd.f32 %v574_v21, %v471_v20 }
 0x205   : > { %v576_v23 = vpop.f32.mrf.mxu1 }
 0x206   : > { %852 = vtanh.f32 %v575_v22  ;;  %v577_v24 = vadd.f32 %v576_v23, %v471_v20 }
 0x208   : > { %854 = vtanh.f32 %v577_v24 }
 0x20b   : > { %v841_v27 = vpop.eup %840 }
 0x20c   : > { %v843_v29 = vpop.eup %842  ;;  %v589_v36 = vmul.f32 %v841_v27, %v545_v30 }
 0x20d   : > { %v845_v31 = vpop.eup %844  ;;  %v587_v41 = vmul.f32 %v843_v29, %v541_v33 }
 0x20e   : > { %v847_v32 = vpop.eup %846  ;;  %v590_v42 = vmul.f32 %v845_v31, %v547_v34 }
 0x20f   : > { %v849_v37 = vpop.eup %848  ;;  %v588_v46 = vmul.f32 %v847_v32, %v543_v38  ;;  %v595_v47 = vadd.f32 %v589_v36, %v587_v41 }
 0x210   : > { %v591_v43 = vmul.f32 %v849_v37, %v551_v35 }
 0x211   : > { %v851_v44 = vpop.eup %850  ;;  %v604_v51 = vadd.f32 %v590_v42, %v588_v46 }
 0x212   : > { %v592_v48 = vmul.f32 %v851_v44, %v553_v40  ;;  %v596_v52 = vadd.f32 %v595_v47, %v591_v43 }
 0x213   : > { %v853_v49 = vpop.eup %852 }
 0x214   : > { %v593_v53 = vmul.f32 %v853_v49, %v555_v45  ;;  %v605_v55 = vadd.f32 %v604_v51, %v592_v48 }
 0x215   : > { %v855_v54 = vpop.eup %854 }
 0x216   : > { %v597_v56 = vadd.f32 %v596_v52, %v593_v53  ;;  %v594_v57 = vmul.f32 %v855_v54, %v557_v50 }
 0x218   : > { %v598_v58 = vrot.slane %v597_v56, 4  ;;  %v606_v59 = vadd.f32 %v605_v55, %v594_v57 }
 0x21a   : > { %v599_v60 = vadd.f32 %v598_v58, %v597_v56  ;;  %v607_v61 = vrot.slane %v606_v59, 4 }
 0x21c   : > { %v608_v62 = vadd.f32 %v607_v61, %v606_v59  ;;  %v600_v63 = vrot.slane %v599_v60, 2 }
 0x21e   : > { %v601_v0 = vadd.f32 %v600_v63, %v599_v60  ;;  %v609_v1 = vrot.slane %v608_v62, 2 }
 0x220   : > { %v602_v6 = vrot.slane %v601_v0, 1  ;;  %v610_v7 = vadd.f32 %v609_v1, %v608_v62 }
 0x222   : > { %v603_v8 = vadd.f32 %v602_v6, %v601_v0  ;;  %v611_v9 = vrot.slane %v610_v7, 1 }
 0x224   : > { %v612_v12 = vadd.f32 %v611_v9, %v610_v7  ;;  %v615_v13 = vadd.f32 %v614_v2, %v603_v8 }
 0x226   : > { %v616_v14 = vadd.f32 %v614_v2, %v612_v12 }
 0x228   : > { %v619_v16 = vcombine.low %v615_v13, %v616_v14 }
 0x22a   : > { %v626_v17 = vrot.slane %v619_v16, %v625_v15 }
 0x22c   : > { %v633_v18 = vrot.slane %v626_v17, %v625_v15 }
 0x22e   : > { %639 = vst.msk [vmem:[%s263_s19] sm:$0x3] %vm637_vm2, %v633_v18 }
 0x22f   : > { %869 = shalt.err (!%p866_p5)
}
 0x230   : > { %s870_s11 = scalar_lea.hbm %s653_s6, 32  ;;  %s874_s14 = scalar_lea.hbm %s1114_s5, 64 }
 0x231   : > { %p871_p7 = scmp.ne.s32.totalorder %s653_s6, %s870_s11  ;;  %p875_p12 = scmp.lt.s32.totalorder %s653_s6, %s1114_s5 }
 0x232   : > { %p876_p13 = scmp.lt.s32.totalorder %s874_s14, %s870_s11 }
 0x233   : > { %p872_p10 = pnand %p871_p7, %p992_p6 }
 0x234   : > { %p877_p0 = por %p876_p13, %p875_p12 }
 0x235   : > { %p873_p11 = pneg %p872_p10 }
 0x237   : > { %p878_p9 = pnand %p877_p0, %p873_p11 }
 0x239   : > { %881 = shalt.err (!%p878_p9)
}
 0x23a   : > { %754 = dma.vmem_to_hbm [thread:$0]  (%p992_p6), %s656_s24, 32, %s653_s6, %s641_s7  }
 0x23b PF: > { %s667_s17 = sand.u32 1, %s904_s20   ;;  %p1118_p1 = scmp.ge.s32.totalorder %s916_s23, 2 }
 0x23c   : > { %s668_s18 = scalar_lea.sflag [#allocation5], %s667_s17 }
 0x23d   : > { %p757_p2 = pnand %p1118_p1, %p996_p8 }
 0x23f   : > { %p758_p3 = pneg %p757_p2 }
 0x241   : > { %899 = dma.done.wait (%p758_p3), %s668_s18, 32  }
 0x242   : > { %901 = vsyncadd (%p758_p3), %s668_s18, 4294967264  ;;  %p16_p9 = scmp.ge.s32.totalorder %s977_s25, 4   ;;  %s1119_s20 = smov %s908_s21 }
 0x243   : > { %s1120_s21 = smov %s912_s22  ;;  %s1121_s22 = smov %s990_s28 }
 0x244   : > { %s1122_s23 = smov %s977_s25  ;;  %18 = sbr.rel (!%p16_p9) target bundleno = 5 (0x5), region = 118 }
 0x249   :  { %673 = vsyncpa [#allocation5], 1 }
 0x24a   :  { %675 = vsyncpa [#allocation5 + $0x1], 1 }

</bundles_post_ra>
